<compile_context>
chip_gen: v5e
topology: v5e:2x2
jax: 0.10.0
libtpu: 0.0.40
codegen_flags: <defaults>
</compile_context>

<pallas_src>
import math

import jax
import jax.numpy as jnp
from jax.experimental import pallas as pl
from jax.experimental.pallas import tpu as pltpu


def _sampler_kernel(
    x_ref, pred_ref,
    w1_ref, b1_ref, wfold_ref, bfold_ref, wf2_ref, bf2_ref,
    wgq_ref, bg1_ref, wgp_ref, wg2_ref, bg2_ref,
    eq_ref, scores_ref,
):
    f32 = jnp.float32

    # --- front MLPs + `final`, with the three second layers folded (host side)
    # into `final`'s first layer.  Exact up to f32 rounding.
    x = x_ref[...]                                                     # (TR, Din) f32
    h = jnp.dot(x, w1_ref[...], preferred_element_type=f32) + b1_ref[...]
    h = jnp.maximum(h, 0.0)                                            # (TR, 3H)
    hf = jnp.dot(h, wfold_ref[...], preferred_element_type=f32) + bfold_ref[...]
    hf = jnp.maximum(hf, 0.0)                                          # (TR, 64)
    eq = jnp.dot(hf, wf2_ref[...], preferred_element_type=f32) + bf2_ref[...]
    eq_ref[...] = eq.astype(eq_ref.dtype)                              # (TR, 2F)

    # --- groupnet(cat(eq, pred_k)) for all K options at once.
    # cat([eq, pred_k]) @ Wg1 == eq @ Wgq + pred_k @ Wgp   (query part computed once)
    hq = jnp.dot(eq, wgq_ref[...], preferred_element_type=f32) + bg1_ref[...]   # (TR, 64)

    k_opt, tr, f2 = pred_ref.shape
    pred = pred_ref[...]                                               # (K, TR, 2F) bf16
    hp = jnp.dot(pred.reshape(k_opt * tr, f2), wgp_ref[...],
                 preferred_element_type=f32)                           # single MXU matmul
    hk = jnp.maximum(hp.reshape(k_opt, tr, -1) + hq[None, :, :], 0.0)  # (K, TR, 64)

    # Final 64->1 layer as a lane reduce (XLU has slack here; only move this to
    # an MXU matmul if bundle analysis shows the XLU saturating).
    w2 = wg2_ref[...].reshape(1, 1, -1)                                # (1, 1, 64)
    scores = jnp.sum(hk * w2, axis=-1) + bg2_ref[...]                  # (K, TR)
    scores_ref[...] = scores.astype(scores_ref.dtype)                  # lane-dense store


def _linear_params(key, fan_in, fan_out, bias=True):
    """PyTorch-style init; weights stored as (in, out), bias as (1, out)."""
    kw, kb = jax.random.split(key)
    bound = 1.0 / math.sqrt(fan_in)
    w = jax.random.uniform(kw, (fan_in, fan_out), jnp.float32, -bound, bound)
    if bias:
        b = jax.random.uniform(kb, (1, fan_out), jnp.float32, -bound, bound)
    else:
        b = jnp.zeros((1, fan_out), jnp.float32)
    return w, b


class SamplerMLPALLPallas:
    """JAX/Pallas equivalent of the PyTorch `SamplerMLPALL` module (forward only).

    The torch constructor's in_channels_* / out_channels_* / heads / depth /
    SWM_out / edge_dim arguments are never used in forward() and are omitted.
    """

    N_OPTIONS = 20  # hardcoded in the PyTorch module's reshape(B, N, 20, -1)

    def __init__(self, key, past_length, future_length, hidden_size_speed=64,
                 bias=True, row_tile=512, pred_dtype=jnp.bfloat16,
                 vmem_limit_bytes=None):
        # row_tile multiple of 128 keeps the lane-dense (K, row_tile) scores
        # block legal when the grid has >1 step.
        assert row_tile % 128 == 0
        self.past_length = int(past_length)
        self.future_length = int(future_length)
        self.hidden = int(hidden_size_speed)
        self.row_tile = int(row_tile)
        self.pred_dtype = pred_dtype
        self.vmem_limit_bytes = vmem_limit_bytes

        F2 = 2 * self.future_length
        T = self.past_length
        H = self.hidden
        ks = jax.random.split(key, 10)
        p = {}
        # mlp_past: Linear(T*2, H, bias) -> ReLU -> Linear(H, 2F)
        p["wp1"], p["bp1"] = _linear_params(ks[0], T * 2, H, bias)
        p["wp2"], p["bp2"] = _linear_params(ks[1], H, F2, True)
        # mlp_speed: Linear(T-1, H, bias) -> ReLU -> Linear(H, 2F)
        p["ws1"], p["bs1"] = _linear_params(ks[2], T - 1, H, bias)
        p["ws2"], p["bs2"] = _linear_params(ks[3], H, F2, True)
        # mlp_dir: Linear(T-1, H, bias) -> ReLU -> Linear(H, 2F)
        p["wd1"], p["bd1"] = _linear_params(ks[4], T - 1, H, bias)
        p["wd2"], p["bd2"] = _linear_params(ks[5], H, F2, True)
        # final: Linear(6F, 64) -> ReLU -> Linear(64, 2F)
        p["wf1"], p["bf1"] = _linear_params(ks[6], 3 * F2, 64, True)
        p["wf2"], p["bf2"] = _linear_params(ks[7], 64, F2, True)
        # groupnet: Linear(4F, 64) -> ReLU -> Linear(64, 1)
        p["wg1"], p["bg1"] = _linear_params(ks[8], 2 * F2, 64, True)
        p["wg2"], p["bg2"] = _linear_params(ks[9], 64, 1, True)
        self.params = p                       # original weights (used by the reference)
        self.kernel_params = self._build_kernel_params()

    def _build_kernel_params(self):
        """Host-side weight packing / folding (done once)."""
        p = self.params
        T, H = self.past_length, self.hidden
        F2 = 2 * self.future_length
        d_in = 2 * T + 2 * (T - 1)

        # Block-diagonal first layer for the three front MLPs over cat(xp, xs, xd).
        w1 = jnp.zeros((d_in, 3 * H), jnp.float32)
        w1 = w1.at[:2 * T, :H].set(p["wp1"])
        w1 = w1.at[2 * T:2 * T + (T - 1), H:2 * H].set(p["ws1"])
        w1 = w1.at[2 * T + (T - 1):, 2 * H:].set(p["wd1"])
        b1 = jnp.concatenate([p["bp1"], p["bs1"], p["bd1"]], axis=-1)

        # Fold the three second layers into final's first layer:
        #   cat(relu(h)@Wp2+bp2, ...) @ Wf1 + bf1
        #     == relu(h) @ vstack(Wp2@Wf1a, Ws2@Wf1b, Wd2@Wf1c) + (bf1 + bp2@Wf1a + ...)
        wf1a, wf1b, wf1c = p["wf1"][:F2], p["wf1"][F2:2 * F2], p["wf1"][2 * F2:]
        wfold = jnp.concatenate(
            [p["wp2"] @ wf1a, p["ws2"] @ wf1b, p["wd2"] @ wf1c], axis=0)   # (3H, 64)
        bfold = p["bf1"] + p["bp2"] @ wf1a + p["bs2"] @ wf1b + p["bd2"] @ wf1c

        return dict(
            w1=w1, b1=b1, wfold=wfold, bfold=bfold,
            wf2=p["wf2"], bf2=p["bf2"],
            wgq=p["wg1"][:F2],                               # query (eq_in) part, f32
            bg1=p["bg1"],
            wgp=p["wg1"][F2:].astype(self.pred_dtype),       # prediction part, bf16
            wg2=p["wg2"].T,                                  # (1, 64) row vector
            bg2=p["bg2"],                                    # (1, 1)
        )

    def _pick_row_tile(self, rows):
        if rows > self.row_tile:
            return self.row_tile
        # Give the megacore (v7x: 2 TCs) >=2 grid steps when there is enough work
        # (rows//2 must stay a multiple of 128 for the lane-dense scores block).
        if rows >= 512 and rows % 256 == 0:
            return rows // 2
        return rows

    def __call__(self, past, visability_mat_past, speed_past, directions_past,
                 edge_features_past, edge_weights_past, prediction):
        # visability_mat_past / edge_features_past / edge_weights_past are
        # unused in the PyTorch forward; accepted for signature parity only.
        B, N, T, C = past.shape
        F = self.future_length
        F2 = 2 * F
        K = prediction.shape[-1]   # torch hard-codes 20; kept general here
        rows = B * N
        f32 = jnp.float32

        # Pre-concatenated front-MLP input (small; one cheap wrapper concat).
        x2 = jnp.concatenate(
            [past.reshape(rows, T * C).astype(f32),
             speed_past.reshape(rows, T - 1).astype(f32),
             directions_past.reshape(rows, T - 1).astype(f32)], axis=-1)

        # prediction (B,N,F,2,K) -> torch permute(0,1,4,2,3).reshape -> (K, rows, 2F)
        # in a SINGLE relayout pass, fused with the bf16 downcast.
        pred3 = jnp.transpose(prediction, (4, 0, 1, 2, 3)) \
                   .reshape(K, rows, F2).astype(self.pred_dtype)

        tr = self._pick_row_tile(rows)
        grid = (pl.cdiv(rows, tr),)

        kp = self.kernel_params
        weights = [kp["w1"], kp["b1"], kp["wfold"], kp["bfold"],
                   kp["wf2"], kp["bf2"], kp["wgq"], kp["bg1"],
                   kp["wgp"], kp["wg2"], kp["bg2"]]
        w_specs = [pl.BlockSpec(w.shape, lambda i: (0, 0)) for w in weights]

        in_specs = [
            pl.BlockSpec((tr, x2.shape[-1]), lambda i: (i, 0)),
            pl.BlockSpec((K, tr, F2), lambda i: (0, i, 0)),
        ] + w_specs

        out_shape = (
            jax.ShapeDtypeStruct((rows, F2), f32),   # eq_in (row major)
            jax.ShapeDtypeStruct((K, rows), f32),    # scores, lane-dense layout
        )
        out_specs = (
            pl.BlockSpec((tr, F2), lambda i: (i, 0)),
            pl.BlockSpec((K, tr), lambda i: (0, i)),
        )

        cp_kwargs = dict(dimension_semantics=("parallel",))
        if self.vmem_limit_bytes is not None:
            cp_kwargs["vmem_limit_bytes"] = int(self.vmem_limit_bytes)

        eq2, scores_kt = pl.pallas_call(
            _sampler_kernel,
            out_shape=out_shape,
            grid=grid,
            in_specs=in_specs,
            out_specs=out_specs,
            compiler_params=pltpu.CompilerParams(**cp_kwargs),
        )(x2, pred3, *weights)

        eq_in = eq2.reshape(B, N, F, 2)
        scores = scores_kt.T.reshape(B, N, K)   # small (K, rows) transpose in wrapper
        return eq_in, scores


def _ref_forward(params, past, speed_past, directions_past, prediction,
                 future_length, pred_dtype=None):
    """Pure-JAX reference mirroring the PyTorch forward (unfolded weights)."""
    B, N, T, C = past.shape
    K = prediction.shape[-1]
    F2 = 2 * future_length
    p = params

    def mlp(x, w1, b1, w2, b2):
        return jnp.maximum(x @ w1 + b1, 0.0) @ w2 + b2

    eq_past = mlp(past.reshape(B, N, T * C), p["wp1"], p["bp1"], p["wp2"], p["bp2"])
    eq_speed = mlp(speed_past.reshape(B, N, T - 1), p["ws1"], p["bs1"], p["ws2"], p["bs2"])
    eq_dir = mlp(directions_past.reshape(B, N, T - 1), p["wd1"], p["bd1"], p["wd2"], p["bd2"])
    eq = mlp(jnp.concatenate([eq_past, eq_speed, eq_dir], axis=-1),
             p["wf1"], p["bf1"], p["wf2"], p["bf2"])                     # (B, N, 2F)

    pred = jnp.transpose(prediction, (0, 1, 4, 2, 3)).reshape(B, N, K, F2)
    wgq, wgp = p["wg1"][:F2], p["wg1"][F2:]
    if pred_dtype is not None:   # match the kernel's reduced-precision pred path
        pred = pred.astype(pred_dtype).astype(jnp.float32)
        wgp = wgp.astype(pred_dtype).astype(jnp.float32)
    h = jnp.maximum(eq[:, :, None, :] @ wgq + pred @ wgp + p["bg1"], 0.0)
    scores = (h @ p["wg2"] + p["bg2"])[..., 0]
    return eq.reshape(B, N, future_length, 2), scores


if __name__ == "__main__":
    key = jax.random.PRNGKey(0)
    k_mod, k_past, k_speed, k_dir, k_pred = jax.random.split(key, 5)

    B, N = 2, 4
    past_length, future_length, hidden = 8, 12, 64
    K = SamplerMLPALLPallas.N_OPTIONS

    model = SamplerMLPALLPallas(k_mod, past_length, future_length,
                                hidden_size_speed=hidden, bias=True)

    past = jax.random.normal(k_past, (B, N, past_length, 2), dtype=jnp.float32)
    speed_past = jax.random.normal(k_speed, (B, N, past_length - 1), dtype=jnp.float32)
    directions_past = jax.random.normal(k_dir, (B, N, past_length - 1), dtype=jnp.float32)
    prediction = jax.random.normal(k_pred, (B, N, future_length, 2, K), dtype=jnp.float32)

    eq_out, scores = model(past, None, speed_past, directions_past,
                           None, None, prediction)
    eq_out = jax.block_until_ready(eq_out)
    scores = jax.block_until_ready(scores)

    assert eq_out.shape == (B, N, future_length, 2)
    assert scores.shape == (B, N, K)

    # Tight check against a reference using the same pred precision (bf16).
    eq_ref, scores_ref = _ref_forward(model.params, past, speed_past,
                                      directions_past, prediction, future_length,
                                      pred_dtype=model.pred_dtype)
    assert jnp.allclose(eq_out, eq_ref, atol=2e-3, rtol=2e-3)
    assert jnp.allclose(scores, scores_ref, atol=2e-3, rtol=2e-3)

    # Loose sanity check against the exact full-f32 torch semantics.
    _, scores_f32 = _ref_forward(model.params, past, speed_past,
                                 directions_past, prediction, future_length,
                                 pred_dtype=None)
    assert jnp.allclose(scores, scores_f32, atol=5e-2, rtol=5e-2)

    print("KERNEL_OK")
</pallas_src>

<mosaic_0001>
module attributes {stable_mosaic.version = 11 : i64} {
  func.func @_sampler_kernel(%arg0: i32, %arg1: memref<8x30xf32, #tpu.memory_space<vmem>>, %arg2: memref<20x8x24xbf16, #tpu.memory_space<vmem>>, %arg3: memref<30x192xf32, #tpu.memory_space<vmem>>, %arg4: memref<1x192xf32, #tpu.memory_space<vmem>>, %arg5: memref<192x64xf32, #tpu.memory_space<vmem>>, %arg6: memref<1x64xf32, #tpu.memory_space<vmem>>, %arg7: memref<64x24xf32, #tpu.memory_space<vmem>>, %arg8: memref<1x24xf32, #tpu.memory_space<vmem>>, %arg9: memref<24x64xf32, #tpu.memory_space<vmem>>, %arg10: memref<1x64xf32, #tpu.memory_space<vmem>>, %arg11: memref<24x64xbf16, #tpu.memory_space<vmem>>, %arg12: memref<1x64xf32, #tpu.memory_space<vmem>>, %arg13: memref<1x1xf32, #tpu.memory_space<vmem>>, %arg14: memref<8x24xf32, #tpu.memory_space<vmem>>, %arg15: memref<20x8xf32, #tpu.memory_space<vmem>>) attributes {dimension_semantics = [#tpu.dimension_semantics<parallel>], iteration_bounds = array<i64: 1>, scalar_prefetch = 0 : i64, scratch_operands = 0 : i64, tpu.core_type = #tpu.core_type<tc>, window_params = [{transform_indices = @transform_0, window_bounds = array<i64: 8, 30>}, {transform_indices = @transform_1, window_bounds = array<i64: 20, 8, 24>}, {pipeline_mode = #tpu.pipeline_mode<synchronous>, transform_indices = @transform_2, window_bounds = array<i64: 30, 192>}, {pipeline_mode = #tpu.pipeline_mode<synchronous>, transform_indices = @transform_3, window_bounds = array<i64: 1, 192>}, {pipeline_mode = #tpu.pipeline_mode<synchronous>, transform_indices = @transform_4, window_bounds = array<i64: 192, 64>}, {pipeline_mode = #tpu.pipeline_mode<synchronous>, transform_indices = @transform_5, window_bounds = array<i64: 1, 64>}, {pipeline_mode = #tpu.pipeline_mode<synchronous>, transform_indices = @transform_6, window_bounds = array<i64: 64, 24>}, {pipeline_mode = #tpu.pipeline_mode<synchronous>, transform_indices = @transform_7, window_bounds = array<i64: 1, 24>}, {pipeline_mode = #tpu.pipeline_mode<synchronous>, transform_indices = @transform_8, window_bounds = array<i64: 24, 64>}, {pipeline_mode = #tpu.pipeline_mode<synchronous>, transform_indices = @transform_9, window_bounds = array<i64: 1, 64>}, {pipeline_mode = #tpu.pipeline_mode<synchronous>, transform_indices = @transform_10, window_bounds = array<i64: 24, 64>}, {pipeline_mode = #tpu.pipeline_mode<synchronous>, transform_indices = @transform_11, window_bounds = array<i64: 1, 64>}, {pipeline_mode = #tpu.pipeline_mode<synchronous>, transform_indices = @transform_12, window_bounds = array<i64: 1, 1>}, {transform_indices = @transform_13, window_bounds = array<i64: 8, 24>}, {transform_indices = @transform_14, window_bounds = array<i64: 20, 8>}]} {
    %c0 = arith.constant 0 : index
    %c0_0 = arith.constant 0 : index
    %0 = vector.load %arg1[%c0, %c0_0] : memref<8x30xf32, #tpu.memory_space<vmem>>, vector<8x30xf32>
    %c0_1 = arith.constant 0 : index
    %c0_2 = arith.constant 0 : index
    %1 = vector.load %arg3[%c0_1, %c0_2] : memref<30x192xf32, #tpu.memory_space<vmem>>, vector<30x192xf32>
    %cst = arith.constant dense<0.000000e+00> : vector<8x192xf32>
    %2 = tpu.matmul %0, %1, %cst {dimension_numbers = #tpu.dot_dimension_numbers<[1], [0], [0], [1], [0, 0, 1, 1], [], []>} : vector<8x30xf32>, vector<30x192xf32>, vector<8x192xf32> -> vector<8x192xf32>
    %c0_3 = arith.constant 0 : index
    %c0_4 = arith.constant 0 : index
    %3 = vector.load %arg4[%c0_3, %c0_4] : memref<1x192xf32, #tpu.memory_space<vmem>>, vector<1x192xf32>
    %4 = vector.broadcast %3 : vector<1x192xf32> to vector<8x192xf32>
    %5 = arith.addf %2, %4 : vector<8x192xf32>
    %cst_5 = arith.constant 0.000000e+00 : f32
    %6 = vector.broadcast %cst_5 : f32 to vector<8x192xf32>
    %7 = arith.maximumf %5, %6 : vector<8x192xf32>
    %c0_6 = arith.constant 0 : index
    %c0_7 = arith.constant 0 : index
    %8 = vector.load %arg5[%c0_6, %c0_7] : memref<192x64xf32, #tpu.memory_space<vmem>>, vector<192x64xf32>
    %cst_8 = arith.constant dense<0.000000e+00> : vector<8x64xf32>
    %9 = tpu.matmul %7, %8, %cst_8 {dimension_numbers = #tpu.dot_dimension_numbers<[1], [0], [0], [1], [0, 0, 1, 1], [], []>} : vector<8x192xf32>, vector<192x64xf32>, vector<8x64xf32> -> vector<8x64xf32>
    %c0_9 = arith.constant 0 : index
    %c0_10 = arith.constant 0 : index
    %10 = vector.load %arg6[%c0_9, %c0_10] : memref<1x64xf32, #tpu.memory_space<vmem>>, vector<1x64xf32>
    %11 = vector.broadcast %10 : vector<1x64xf32> to vector<8x64xf32>
    %12 = arith.addf %9, %11 : vector<8x64xf32>
    %cst_11 = arith.constant 0.000000e+00 : f32
    %13 = vector.broadcast %cst_11 : f32 to vector<8x64xf32>
    %14 = arith.maximumf %12, %13 : vector<8x64xf32>
    %c0_12 = arith.constant 0 : index
    %c0_13 = arith.constant 0 : index
    %15 = vector.load %arg7[%c0_12, %c0_13] : memref<64x24xf32, #tpu.memory_space<vmem>>, vector<64x24xf32>
    %cst_14 = arith.constant dense<0.000000e+00> : vector<8x24xf32>
    %16 = tpu.matmul %14, %15, %cst_14 {dimension_numbers = #tpu.dot_dimension_numbers<[1], [0], [0], [1], [0, 0, 1, 1], [], []>} : vector<8x64xf32>, vector<64x24xf32>, vector<8x24xf32> -> vector<8x24xf32>
    %c0_15 = arith.constant 0 : index
    %c0_16 = arith.constant 0 : index
    %17 = vector.load %arg8[%c0_15, %c0_16] : memref<1x24xf32, #tpu.memory_space<vmem>>, vector<1x24xf32>
    %18 = vector.broadcast %17 : vector<1x24xf32> to vector<8x24xf32>
    %19 = arith.addf %16, %18 : vector<8x24xf32>
    %c0_17 = arith.constant 0 : index
    %c0_18 = arith.constant 0 : index
    %20 = vector.load %arg14[%c0_17, %c0_18] : memref<8x24xf32, #tpu.memory_space<vmem>>, vector<8x24xf32>
    tpu.vector_store %arg14[%c0_17, %c0_18], %19 {strides = array<i32>} : memref<8x24xf32, #tpu.memory_space<vmem>>, vector<8x24xf32>,
    %c0_19 = arith.constant 0 : index
    %c0_20 = arith.constant 0 : index
    %21 = vector.load %arg9[%c0_19, %c0_20] : memref<24x64xf32, #tpu.memory_space<vmem>>, vector<24x64xf32>
    %cst_21 = arith.constant dense<0.000000e+00> : vector<8x64xf32>
    %22 = tpu.matmul %19, %21, %cst_21 {dimension_numbers = #tpu.dot_dimension_numbers<[1], [0], [0], [1], [0, 0, 1, 1], [], []>} : vector<8x24xf32>, vector<24x64xf32>, vector<8x64xf32> -> vector<8x64xf32>
    %c0_22 = arith.constant 0 : index
    %c0_23 = arith.constant 0 : index
    %23 = vector.load %arg10[%c0_22, %c0_23] : memref<1x64xf32, #tpu.memory_space<vmem>>, vector<1x64xf32>
    %24 = vector.broadcast %23 : vector<1x64xf32> to vector<8x64xf32>
    %25 = arith.addf %22, %24 : vector<8x64xf32>
    %c0_24 = arith.constant 0 : index
    %c0_25 = arith.constant 0 : index
    %c0_26 = arith.constant 0 : index
    %26 = vector.load %arg2[%c0_24, %c0_25, %c0_26] : memref<20x8x24xbf16, #tpu.memory_space<vmem>>, vector<20x8x24xbf16>
    %27 = vector.shape_cast %26 : vector<20x8x24xbf16> to vector<160x24xbf16>
    %c0_27 = arith.constant 0 : index
    %c0_28 = arith.constant 0 : index
    %28 = vector.load %arg11[%c0_27, %c0_28] : memref<24x64xbf16, #tpu.memory_space<vmem>>, vector<24x64xbf16>
    %cst_29 = arith.constant dense<0.000000e+00> : vector<160x64xf32>
    %29 = tpu.matmul %27, %28, %cst_29 {dimension_numbers = #tpu.dot_dimension_numbers<[1], [0], [0], [1], [0, 0, 1, 1], [], []>} : vector<160x24xbf16>, vector<24x64xbf16>, vector<160x64xf32> -> vector<160x64xf32>
    %30 = vector.shape_cast %29 : vector<160x64xf32> to vector<20x8x64xf32>
    %31 = vector.shape_cast %25 : vector<8x64xf32> to vector<1x8x64xf32>
    %32 = vector.broadcast %31 : vector<1x8x64xf32> to vector<20x8x64xf32>
    %33 = arith.addf %30, %32 : vector<20x8x64xf32>
    %cst_30 = arith.constant 0.000000e+00 : f32
    %34 = vector.broadcast %cst_30 : f32 to vector<20x8x64xf32>
    %35 = arith.maximumf %33, %34 : vector<20x8x64xf32>
    %c0_31 = arith.constant 0 : index
    %c0_32 = arith.constant 0 : index
    %36 = vector.load %arg12[%c0_31, %c0_32] : memref<1x64xf32, #tpu.memory_space<vmem>>, vector<1x64xf32>
    %37 = vector.shape_cast %36 : vector<1x64xf32> to vector<1x1x64xf32>
    %38 = vector.broadcast %37 : vector<1x1x64xf32> to vector<20x8x64xf32>
    %39 = arith.mulf %35, %38 : vector<20x8x64xf32>
    %cst_33 = arith.constant dense<0.000000e+00> : vector<20x8xf32>
    %40 = vector.multi_reduction <add>, %39, %cst_33 [2] : vector<20x8x64xf32> to vector<20x8xf32>
    %c0_34 = arith.constant 0 : index
    %c0_35 = arith.constant 0 : index
    %41 = vector.load %arg13[%c0_34, %c0_35] : memref<1x1xf32, #tpu.memory_space<vmem>>, vector<1x1xf32>
    %42 = vector.broadcast %41 : vector<1x1xf32> to vector<20x8xf32>
    %43 = arith.addf %40, %42 : vector<20x8xf32>
    %c0_36 = arith.constant 0 : index
    %c0_37 = arith.constant 0 : index
    %44 = vector.load %arg15[%c0_36, %c0_37] : memref<20x8xf32, #tpu.memory_space<vmem>>, vector<20x8xf32>
    tpu.vector_store %arg15[%c0_36, %c0_37], %43 {strides = array<i32>} : memref<20x8xf32, #tpu.memory_space<vmem>>, vector<20x8xf32>,
    return
  }
  func.func @transform_0(%arg0: i32) -> (i32, i32) {
    %c0_i32 = arith.constant 0 : i32
    %c0_i32_0 = arith.constant 0 : i32
    return %arg0, %c0_i32 : i32, i32
  }
  func.func @transform_1(%arg0: i32) -> (i32, i32, i32) {
    %c0_i32 = arith.constant 0 : i32
    %c0_i32_0 = arith.constant 0 : i32
    %c0_i32_1 = arith.constant 0 : i32
    return %c0_i32, %arg0, %c0_i32_0 : i32, i32, i32
  }
  func.func @transform_2(%arg0: i32) -> (i32, i32) {
    %c0_i32 = arith.constant 0 : i32
    %c0_i32_0 = arith.constant 0 : i32
    %c0_i32_1 = arith.constant 0 : i32
    return %c0_i32, %c0_i32_0 : i32, i32
  }
  func.func @transform_3(%arg0: i32) -> (i32, i32) {
    %c0_i32 = arith.constant 0 : i32
    %c0_i32_0 = arith.constant 0 : i32
    %c0_i32_1 = arith.constant 0 : i32
    return %c0_i32, %c0_i32_0 : i32, i32
  }
  func.func @transform_4(%arg0: i32) -> (i32, i32) {
    %c0_i32 = arith.constant 0 : i32
    %c0_i32_0 = arith.constant 0 : i32
    %c0_i32_1 = arith.constant 0 : i32
    return %c0_i32, %c0_i32_0 : i32, i32
  }
  func.func @transform_5(%arg0: i32) -> (i32, i32) {
    %c0_i32 = arith.constant 0 : i32
    %c0_i32_0 = arith.constant 0 : i32
    %c0_i32_1 = arith.constant 0 : i32
    return %c0_i32, %c0_i32_0 : i32, i32
  }
  func.func @transform_6(%arg0: i32) -> (i32, i32) {
    %c0_i32 = arith.constant 0 : i32
    %c0_i32_0 = arith.constant 0 : i32
    %c0_i32_1 = arith.constant 0 : i32
    return %c0_i32, %c0_i32_0 : i32, i32
  }
  func.func @transform_7(%arg0: i32) -> (i32, i32) {
    %c0_i32 = arith.constant 0 : i32
    %c0_i32_0 = arith.constant 0 : i32
    %c0_i32_1 = arith.constant 0 : i32
    return %c0_i32, %c0_i32_0 : i32, i32
  }
  func.func @transform_8(%arg0: i32) -> (i32, i32) {
    %c0_i32 = arith.constant 0 : i32
    %c0_i32_0 = arith.constant 0 : i32
    %c0_i32_1 = arith.constant 0 : i32
    return %c0_i32, %c0_i32_0 : i32, i32
  }
  func.func @transform_9(%arg0: i32) -> (i32, i32) {
    %c0_i32 = arith.constant 0 : i32
    %c0_i32_0 = arith.constant 0 : i32
    %c0_i32_1 = arith.constant 0 : i32
    return %c0_i32, %c0_i32_0 : i32, i32
  }
  func.func @transform_10(%arg0: i32) -> (i32, i32) {
    %c0_i32 = arith.constant 0 : i32
    %c0_i32_0 = arith.constant 0 : i32
    %c0_i32_1 = arith.constant 0 : i32
    return %c0_i32, %c0_i32_0 : i32, i32
  }
  func.func @transform_11(%arg0: i32) -> (i32, i32) {
    %c0_i32 = arith.constant 0 : i32
    %c0_i32_0 = arith.constant 0 : i32
    %c0_i32_1 = arith.constant 0 : i32
    return %c0_i32, %c0_i32_0 : i32, i32
  }
  func.func @transform_12(%arg0: i32) -> (i32, i32) {
    %c0_i32 = arith.constant 0 : i32
    %c0_i32_0 = arith.constant 0 : i32
    %c0_i32_1 = arith.constant 0 : i32
    return %c0_i32, %c0_i32_0 : i32, i32
  }
  func.func @transform_13(%arg0: i32) -> (i32, i32) {
    %c0_i32 = arith.constant 0 : i32
    %c0_i32_0 = arith.constant 0 : i32
    return %arg0, %c0_i32 : i32, i32
  }
  func.func @transform_14(%arg0: i32) -> (i32, i32) {
    %c0_i32 = arith.constant 0 : i32
    %c0_i32_0 = arith.constant 0 : i32
    return %c0_i32, %arg0 : i32, i32
  }
}

</mosaic_0001>

<bundles_post_ra>
// kernel: tpu_custom_call.1
= control target key start
LH: loop header
LB: loop body
LE: loop exit
PB: predicated region body
PF: predicated region fallthrough
CT: control target
= control target key end

     0   :  { %s1211_s0 = inlined_call_operand.vmem [shape: f32[8,30], index: 0, kind: input, shape index: {}]   ;;  %s1212_s1 = inlined_call_operand.vmem [shape: bf16[20,8,24], index: 1, kind: input, shape index: {}]   ;;  %s1213_s2 = inlined_call_operand.vmem [shape: f32[30,192], index: 2, kind: input, shape index: {}]   ;;  %s1214_s3 = inlined_call_operand.vmem [shape: f32[1,192], index: 3, kind: input, shape index: {}]   ;;  %s1215_s4 = inlined_call_operand.vmem [shape: f32[192,64], index: 4, kind: input, shape index: {}]   ;;  %s1216_s5 = inlined_call_operand.vmem [shape: f32[1,64], index: 5, kind: input, shape index: {}]   ;;  %s1217_s6 = inlined_call_operand.vmem [shape: f32[64,24], index: 6, kind: input, shape index: {}]   ;;  %s1218_s7 = inlined_call_operand.vmem [shape: f32[1,24], index: 7, kind: input, shape index: {}]   ;;  %s1219_s8 = inlined_call_operand.vmem [shape: f32[24,64], index: 8, kind: input, shape index: {}]   ;;  %s1220_s9 = inlined_call_operand.vmem [shape: f32[1,64], index: 9, kind: input, shape index: {}]   ;;  %s1221_s10 = inlined_call_operand.vmem [shape: bf16[24,64], index: 10, kind: input, shape index: {}]   ;;  %s1222_s11 = inlined_call_operand.vmem [shape: f32[1,64], index: 11, kind: input, shape index: {}]   ;;  %s1223_s12 = inlined_call_operand.<no memory space> [shape: f32[1,1], index: 12, kind: input, shape index: {}]   ;;  %s1224_s13 = inlined_call_operand.hbm [shape: f32[8,24], index: 13, kind: output, shape index: {0}]   ;;  %s1225_s14 = inlined_call_operand.vmem [shape: f32[20,8], index: 14, kind: output, shape index: {1}]  }
   0x1   :  { %v20_v0 = vstv %s1223_s12 }
   0x2   :  { %21 = vst [vmem:[#allocation2] sm:$0x1] %v20_v0 }
   0x3   :  { %v57_v1 = vld [vmem:[%s1213_s2 + $0x30] sm:$0x3f]  ;;  %vm69_vm0 = vcmask 1045504   ;;  %v55_v2 = vld [vmem:[%s1213_s2 + $0x20] sm:$0xff]  ;;  %v58_v3 = vld [vmem:[%s1213_s2 + $0x38] sm:$0x3f] }
   0x4   :  { %678 = vmatpush.msk.msra.mxu2 %vm69_vm0, %v57_v1  ;;  %v53_v4 = vld [vmem:[%s1213_s2 + $0x10] sm:$0xff]  ;;  %680 = vmatpush.msk.msra.mxu1 %vm69_vm0, %v58_v3  ;;  %v56_v5 = vld [vmem:[%s1213_s2 + $0x28] sm:$0xff]  ;;  %v54_v6 = vld [vmem:[%s1213_s2 + $0x18] sm:$0xff]  ;;  %vm65_vm1 = vcmask 244736  }
   0x5   :  { %v51_v7 = vld [vmem:[%s1213_s2] sm:$0xff]  ;;  %v52_v9 = vld [vmem:[%s1213_s2 + $0x8] sm:$0xff]  ;;  %v133_v10 = vld [vmem:[%s1215_s4 + $0x78] sm:$0xff] }
   0x6   :  { %89 = vmatpush.msra.mxu2 %v55_v2  ;;  %109 = vmatpush.msra.mxu1 %v56_v5  ;;  %v50_v8 = vld [vmem:[%s1211_s0] sm:$0xff]  ;;  %v141_v11 = vld [vmem:[%s1215_s4 + $0xb8] sm:$0xff]  ;;  %v140_v12 = vld [vmem:[%s1215_s4 + $0xb0] sm:$0xff] }
   0x7   :  { %178 = vmatpush.msra.mxu3 %v141_v11  ;;  %v132_v13 = vld [vmem:[%s1215_s4 + $0x70] sm:$0xff]  ;;  %v131_v14 = vld [vmem:[%s1215_s4 + $0x68] sm:$0xff]  ;;  %v138_v16 = vld [vmem:[%s1215_s4 + $0xa0] sm:$0xff] }
   0x8   :  { %90 = vmatpush.msra.mxu2 %v53_v4  ;;  %110 = vmatpush.msra.mxu1 %v54_v6  ;;  %v139_v15 = vld [vmem:[%s1215_s4 + $0xa8] sm:$0xff] }
   0x9   :  { %179 = vmatpush.msra.mxu3 %v140_v12 }
   0xa   :  { %91 = vmatpush.msra.mxu2 %v51_v7  ;;  %111 = vmatpush.msra.mxu1 %v52_v9 }
   0xb   :  { %679 = vmatmul.msk.f32.vlgmr.msra.gmra.mxu2 %vm65_vm1, %v50_v8  ;;  %681 = vmatmul.msk.f32.vlgmr.msra.gmra.mxu1 %vm65_vm1, %v50_v8 }
   0xc   :  { %150 = vmatpush.msrb.mxu2 %v133_v10 }
   0xe   :  { %151 = vmatpush.msrb.mxu2 %v132_v13 }
   0xf   :  { %22 = vsyncpa [#allocation4], 0  ;;  %v130_v17 = vld [vmem:[%s1215_s4 + $0x60] sm:$0xff]  ;;  %180 = vmatpush.msra.mxu3 %v139_v15  ;;  %v129_v18 = vld [vmem:[%s1215_s4 + $0x58] sm:$0xff]  ;;  %vm146_vm2 = vcmask 523264   ;;  %vm370_vm3 = vcmask 1043456  }
  0x10   :  { %152 = vmatpush.msrb.mxu2 %v131_v14  ;;  %v128_v19 = vld [vmem:[%s1215_s4 + $0x50] sm:$0xff]  ;;  %v127_v20 = vld [vmem:[%s1215_s4 + $0x48] sm:$0xff]  ;;  %v126_v21 = vld [vmem:[%s1215_s4 + $0x40] sm:$0xff]  ;;  %vm226_vm4 = vcmask 195584   ;;  %v789_v13 = vmov 0   ;;  %s665_s29 = sshll.u32 %s1224_s13, 4  ;;  %s666_s29 = int_to_ptr.hbm [resolvable:$true] %s665_s29 }
  0x11   :  { %181 = vmatpush.msra.mxu3 %v138_v16  ;;  %v125_v22 = vld [vmem:[%s1215_s4 + $0x38] sm:$0xff]  ;;  %v124_v23 = vld [vmem:[%s1215_s4 + $0x30] sm:$0xff]  ;;  %v123_v24 = vld [vmem:[%s1215_s4 + $0x28] sm:$0xff]  ;;  %756 = vset.pattern.permute.xlu2 %v789_v13  ;;  %s790_s30 = smov [#allocation3]   ;;  %vm626_vm5 = vcmask 1041409   ;;  %vm628_vm6 = vcmask 1042434  }
  0x12   :  { %153 = vmatpush.msrb.mxu2 %v130_v17  ;;  %v122_v25 = vld [vmem:[%s1215_s4 + $0x20] sm:$0xff]  ;;  %v121_v26 = vld [vmem:[%s1215_s4 + $0x18] sm:$0xff]  ;;  %v120_v27 = vld [vmem:[%s1215_s4 + $0x10] sm:$0xff]  ;;  %757 = vset.pattern.permute.xlu0 %v789_v13  ;;  %vm630_vm7 = vcmask 1043459   ;;  %vm632_vm8 = vcmask 1044484   ;;  %vm634_vm9 = vcmask 1045509  }
  0x13   :  { %v137_v28 = vld [vmem:[%s1215_s4 + $0x98] sm:$0xff]  ;;  %v119_v29 = vld [vmem:[%s1215_s4 + $0x8] sm:$0xff]  ;;  %v136_v30 = vld [vmem:[%s1215_s4 + $0x90] sm:$0xff]  ;;  %vm636_vm10 = vcmask 1046534   ;;  %vm638_vm11 = vcmask 1047559   ;;  %vm653_vm12 = vcmask 64512  }
  0x14   :  { %154 = vmatpush.msrb.mxu2 %v129_v18  ;;  %182 = vmatpush.msra.mxu3 %v137_v28  ;;  %v118_v31 = vld [vmem:[%s1215_s4] sm:$0xff]  ;;  %v135_v32 = vld [vmem:[%s1215_s4 + $0x88] sm:$0xff]  ;;  %v198_v34 = vld [vmem:[%s1217_s6 + $0x38] sm:$0xff]  ;;  %vm656_vm13 = vcmask 60416  }
  0x15   :  { %v134_v33 = vld [vmem:[%s1215_s4 + $0x80] sm:$0xff]  ;;  %v197_v35 = vld [vmem:[%s1217_s6 + $0x30] sm:$0xff]  ;;  %v196_v36 = vld [vmem:[%s1217_s6 + $0x28] sm:$0xff]  ;;  %s663_s4 = sshll.u32 %s790_s30, 4  ;;  %s664_s4 = int_to_ptr.vmem [resolvable:$true] %s663_s4 }
  0x16   :  { %155 = vmatpush.msrb.mxu2 %v128_v19  ;;  %183 = vmatpush.msra.mxu3 %v136_v30  ;;  %v195_v37 = vld [vmem:[%s1217_s6 + $0x20] sm:$0xff]  ;;  %v194_v47 = vld [vmem:[%s1217_s6 + $0x18] sm:$0xff]  ;;  %v193_v48 = vld [vmem:[%s1217_s6 + $0x10] sm:$0xff] }
  0x17   :  { %v59_v38 = vld [vmem:[%s1214_s3] sm:$0x3]  ;;  %v192_v49 = vld [vmem:[%s1217_s6 + $0x8] sm:$0xff]  ;;  %v746_v57 = vld [vmem:[%s1212_s1 + $0x38] sm:$0xff] }
  0x18   :  { %156 = vmatpush.msrb.mxu2 %v127_v20  ;;  %184 = vmatpush.msra.mxu3 %v135_v32  ;;  %v62_v39 = vperm.slane %v59_v38, 1  ;;  %v61_v42 = vperm.slane %v59_v38, 0  ;;  %v191_v50 = vld [vmem:[%s1217_s6] sm:$0xff]  ;;  %v280_v51 = vld [vmem:[%s1221_s10 + $0x8] sm:$0xf]  ;;  %v230_v58 = vld [vmem:[%s1219_s8 + $0x10] sm:$0xff] }
  0x19   :  { %v336_v52 = vunpack.c.l.b16 %v280_v51  ;;  %v749_v55 = vld [vmem:[%s1221_s10] sm:$0xff]  ;;  %251 = vmatpush.msrb.mxu1 %v230_v58  ;;  %v740_v62 = vld [vmem:[%s1212_s1 + $0x8] sm:$0xff]  ;;  %v741_v4 = vld [vmem:[%s1212_s1 + $0x10] sm:$0xff] }
  0x1a   :  { %157 = vmatpush.msrb.mxu2 %v126_v21  ;;  %185 = vmatpush.msra.mxu3 %v134_v33  ;;  %v739_v56 = vld [vmem:[%s1212_s1] sm:$0xff]  ;;  %v229_v2 = vld [vmem:[%s1219_s8 + $0x8] sm:$0xff]  ;;  %v742_v6 = vld [vmem:[%s1212_s1 + $0x18] sm:$0xff] }
  0x1b   :  { %v338_v53 = vpack.c.b16 %v336_v52, %v336_v52  ;;  %v758_v59 = vld [vmem:[%s1216_s5] ss:$0 sm:$0xff]  ;;  %252 = vmatpush.msrb.mxu1 %v229_v2  ;;  %v748_v5 = vld [vmem:[%s1212_s1 + $0x48] sm:$0xff]  ;;  %v745_v15 = vld [vmem:[%s1212_s1 + $0x30] sm:$0xff] }
  0x1c   :  { %158 = vmatpush.msrb.mxu2 %v125_v22  ;;  %v747_v63 = vld [vmem:[%s1212_s1 + $0x40] sm:$0xff]  ;;  %v744_v14 = vld [vmem:[%s1212_s1 + $0x28] sm:$0xff] }
  0x1d   :  { %v372_v54 = vsel %vm370_vm3, %v338_v53, 0  ;;  %v228_v7 = vld [vmem:[%s1219_s8] sm:$0xff] }
  0x1e   :  { %159 = vmatpush.msrb.mxu2 %v124_v23  ;;  %380 = vmatpush.bf16.msra.mxu0 %v372_v54  ;;  %v759_v8 = vld [vmem:[%s1218_s7] ss:$0 sm:$0xff] }
  0x1f   :  { %751 = vmatpush.bf16.msrb.mxu3 %v372_v54  ;;  %253 = vmatpush.msrb.mxu1 %v228_v7  ;;  %v743_v11 = vld [vmem:[%s1212_s1 + $0x20] sm:$0xff] }
  0x20   :  { %160 = vmatpush.msrb.mxu2 %v123_v24  ;;  %v760_v12 = vld [vmem:[#allocation2] ss:$0 sm:$0xff] }
  0x21   :  { %750 = vmatpush.bf16.msra.mxu1 %v372_v54  ;;  %561 = vperm.xlu2 %756, %v760_v12   ;;  %v761_v24 = vld [vmem:[%s1220_s9] ss:$0 sm:$0xff] }
  0x22   :  { %161 = vmatpush.msrb.mxu2 %v122_v25  ;;  %381 = vmatpush.bf16.msra.mxu0 %v749_v55  ;;  %v1073_v30 = vld [vmem:[%s1222_s11] ss:$0 sm:$0xff] }
  0x23   :  { %753 = vmatpush.bf16.msrb.mxu3 %v749_v55 }
  0x24   :  { %162 = vmatpush.msrb.mxu2 %v121_v26 }
  0x25   :  { %729 = vmatmul.msk.bf16.vlgmr.msra.gmra.mxu0 %vm226_vm4, %v739_v56  ;;  %752 = vmatpush.bf16.msra.mxu1 %v749_v55 }
  0x26   :  { %163 = vmatpush.msrb.mxu2 %v120_v27 }
  0x28   :  { %164 = vmatpush.msrb.mxu2 %v119_v29 }
  0x2a   :  { %165 = vmatpush.msrb.mxu2 %v118_v31 }
  0x2c   :  { %214 = vmatpush.msra.mxu2 %v198_v34 }
  0x2e   :  { %215 = vmatpush.msra.mxu2 %v197_v35 }
  0x30   :  { %216 = vmatpush.msra.mxu2 %v196_v36 }
  0x32   :  { %217 = vmatpush.msra.mxu2 %v195_v37 }
  0x34   :  { %218 = vmatpush.msra.mxu2 %v194_v47 }
  0x35   :  { %730 = vmatmul.msk.bf16.gmra.mxu0 %vm226_vm4, %v740_v62 }
  0x36   :  { %219 = vmatpush.msra.mxu2 %v193_v48 }
  0x38   :  { %220 = vmatpush.msra.mxu2 %v192_v49 }
  0x3a   :  { %221 = vmatpush.msra.mxu2 %v191_v50 }
  0x45   :  { %731 = vmatmul.msk.bf16.gmra.mxu0 %vm226_vm4, %v741_v4 }
  0x55   :  { %732 = vmatmul.msk.bf16.gmra.mxu0 %vm226_vm4, %v742_v6 }
  0x88   :  { %v113_v40 = vpop.f32.mrf.mxu1 }
  0x89   :  { %v114_v41 = vadd.f32 %v113_v40, %v62_v39 }
  0x8b   :  { %v117_v43 = vmax.f32 %v114_v41, 0.0 }
  0x8d   :  { %682 = vmatmul.msk.f32.vlgmr.msra.gmra.mxu3 %vm146_vm2, %v117_v43 }
  0x8e   :  { %v93_v44 = vpop.f32.mrf.mxu2 }
  0x8f   :  { %v94_v45 = vadd.f32 %v93_v44, %v61_v42 }
  0x91   :  { %v116_v46 = vmax.f32 %v94_v45, 0.0 }
  0x93   :  { %166 = vmatmul.f32.vlgmr.msrb.gmra.mxu2 %v116_v46 }
  0x95   :  { %736 = vmatmul.msk.bf16.vlgmr.msrb.gmra.mxu3 %vm226_vm4, %v746_v57 }
  0xa2   :  { %v383_v16 = vpop.f32.mrf.mxu0 }
  0xa5   :  { %737 = vmatmul.msk.bf16.gmra.mxu3 %vm226_vm4, %v747_v63 }
  0xaa   :  { %v385_v17 = vpop.f32.mrf.mxu0 }
  0xb2   :  { %v388_v18 = vpop.f32.mrf.mxu0 }
  0xb5   :  { %738 = vmatmul.msk.bf16.gmra.mxu3 %vm226_vm4, %v748_v5 }
  0xba   :  { %v390_v19 = vpop.f32.mrf.mxu0 }
  0xc2   :  { %v393_v21 = vpop.f32.mrf.mxu0 }
  0xca   :  { %v395_v23 = vpop.f32.mrf.mxu0 }
  0xd2   :  { %v398_v26 = vpop.f32.mrf.mxu0 }
  0xda   :  { %v400_v48 = vpop.f32.mrf.mxu0 }
 0x110   :  { %v187_v61 = vpop.f32.mrf.mxu3 }
 0x116   :  { %v167_v60 = vpop.f32.mrf.mxu2 }
 0x117   :  { %v168_v0 = vadd.f32 %v758_v59, %v167_v60 }
 0x118   :  { %v1060_v20 = vpop.f32.mrf.mxu3 }
 0x119   :  { %v188_v1 = vadd.f32 %v187_v61, %v168_v0 }
 0x11b   :  { %v190_v3 = vmax.f32 %v188_v1, 0.0 }
 0x11d   :  { %683 = vmatmul.msk.f32.vlgmr.msra.gmra.mxu2 %vm146_vm2, %v190_v3 }
 0x120   :  { %v1062_v22 = vpop.f32.mrf.mxu3 }
 0x128   :  { %v423_v25 = vpop.f32.mrf.mxu3 }
 0x130   :  { %v425_v47 = vpop.f32.mrf.mxu3 }
 0x138   :  { %v428_v0 = vpop.f32.mrf.mxu3 }
 0x1a0   :  { %v223_v9 = vpop.f32.mrf.mxu2 }
 0x1a1   :  { %v224_v10 = vadd.f32 %v759_v8, %v223_v9 }
 0x1a3   :  { %227 = vst.msk [vmem:[#allocation3] sm:$0xff] %vm226_vm4, %v224_v10  ;;  %684 = vmatmul.msk.f32.vlgmr.msrb.gmra.mxu1 %vm226_vm4, %v224_v10 }
 0x1a4   :  { %668 = dma.vmem_to_hbm [thread:$0]  %s664_s4, 128, %s666_s29, [#allocation4]  }
 0x1ab   :  { %733 = vmatmul.msk.bf16.vlgmr.msra.gmra.mxu1 %vm226_vm4, %v743_v11 }
 0x1bb   :  { %734 = vmatmul.msk.bf16.gmra.mxu1 %vm226_vm4, %v744_v14 }
 0x1cb   :  { %735 = vmatmul.msk.bf16.gmra.mxu1 %vm226_vm4, %v745_v15 }
 0x220   :  { %v255_v27 = vpop.f32.mrf.mxu1 }
 0x221   :  { %v1067_v28 = vadd.f32 %v761_v24, %v255_v27 }
 0x223   :  { %v437_v29 = vadd.f32 %v393_v21, %v1067_v28  ;;  %v435_v31 = vadd.f32 %v388_v18, %v1067_v28  ;;  %v433_v32 = vadd.f32 %v383_v16, %v1067_v28  ;;  %v438_v35 = vadd.f32 %v395_v23, %v1067_v28 }
 0x224   :  { %v436_v36 = vadd.f32 %v390_v19, %v1067_v28  ;;  %v434_v38 = vadd.f32 %v385_v17, %v1067_v28  ;;  %v440_v51 = vadd.f32 %v400_v48, %v1067_v28  ;;  %v439_v56 = vadd.f32 %v398_v26, %v1067_v28 }
 0x225   :  { %v457_v33 = vmax.f32 %v437_v29, 0.0  ;;  %v455_v34 = vmax.f32 %v435_v31, 0.0  ;;  %v453_v37 = vmax.f32 %v433_v32, 0.0  ;;  %v458_v45 = vmax.f32 %v438_v35, 0.0 }
 0x226   :  { %v456_v46 = vmax.f32 %v436_v36, 0.0  ;;  %v454_v50 = vmax.f32 %v434_v38, 0.0  ;;  %v460_v58 = vmax.f32 %v440_v51, 0.0  ;;  %v459_v63 = vmax.f32 %v439_v56, 0.0 }
 0x227   :  { %v481_v39 = vmul.f32 %v1073_v30, %v457_v33  ;;  %v479_v40 = vmul.f32 %v1073_v30, %v455_v34  ;;  %v477_v42 = vmul.f32 %v1073_v30, %v453_v37  ;;  %v482_v53 = vmul.f32 %v1073_v30, %v458_v45 }
 0x228   :  { %v403_v41 = vpop.f32.mrf.mxu1  ;;  %v480_v54 = vmul.f32 %v1073_v30, %v456_v46  ;;  %v478_v55 = vmul.f32 %v1073_v30, %v454_v50  ;;  %v484_v2 = vmul.f32 %v1073_v30, %v460_v58  ;;  %v451_v3 = vadd.f32 %v428_v0, %v1067_v28 }
 0x229   :  { %v509_v43 = vsel %vm146_vm2, %v481_v39, 0.0  ;;  %v503_v44 = vsel %vm146_vm2, %v479_v40, 0.0  ;;  %v497_v49 = vsel %vm146_vm2, %v477_v42, 0.0  ;;  %v441_v52 = vadd.f32 %v403_v41, %v1067_v28 }
 0x22a   :  { %510 = vadd.xlane.f32.xlu2 %v509_v43  ;;  %504 = vadd.xlane.f32.xlu1 %v503_v44  ;;  %v512_v60 = vsel %vm146_vm2, %v482_v53, 0.0  ;;  %v506_v61 = vsel %vm146_vm2, %v480_v54, 0.0  ;;  %v500_v62 = vsel %vm146_vm2, %v478_v55, 0.0  ;;  %v449_v4 = vadd.f32 %v423_v25, %v1067_v28  ;;  %v430_v44 = vpop.f32.mrf.mxu3 }
 0x22b   :  { %498 = vadd.xlane.f32.xlu0 %v497_v49  ;;  %v461_v59 = vmax.f32 %v441_v52, 0.0  ;;  %v483_v5 = vmul.f32 %v1073_v30, %v459_v63  ;;  %v450_v6 = vadd.f32 %v425_v47, %v1067_v28  ;;  %v518_v9 = vsel %vm146_vm2, %v484_v2, 0.0 }
 0x22c   :  { %v471_v10 = vmax.f32 %v451_v3, 0.0  ;;  %v469_v11 = vmax.f32 %v449_v4, 0.0  ;;  %v447_v16 = vadd.f32 %v1060_v20, %v1067_v28  ;;  %v452_v47 = vadd.f32 %v430_v44, %v1067_v28 }
 0x22d   :  { %v485_v1 = vmul.f32 %v1073_v30, %v461_v59  ;;  %v515_v12 = vsel %vm146_vm2, %v483_v5, 0.0  ;;  %v470_v13 = vmax.f32 %v450_v6, 0.0  ;;  %v448_v50 = vadd.f32 %v1062_v22, %v1067_v28 }
 0x22e   :  { %v495_v14 = vmul.f32 %v1073_v30, %v471_v10  ;;  %v493_v15 = vmul.f32 %v1073_v30, %v469_v11  ;;  %v467_v24 = vmax.f32 %v447_v16, 0.0  ;;  %v472_v51 = vmax.f32 %v452_v47, 0.0 }
 0x22f   :  { %v521_v8 = vsel %vm146_vm2, %v485_v1, 0.0  ;;  %v494_v18 = vmul.f32 %v1073_v30, %v470_v13  ;;  %v468_v54 = vmax.f32 %v448_v50, 0.0 }
 0x230   :  { %v405_v57 = vpop.f32.mrf.mxu1  ;;  %v551_v21 = vsel %vm146_vm2, %v495_v14, 0.0  ;;  %v545_v23 = vsel %vm146_vm2, %v493_v15, 0.0  ;;  %v491_v20 = vmul.f32 %v1073_v30, %v467_v24  ;;  %v496_v55 = vmul.f32 %v1073_v30, %v472_v51 }
 0x231   :  { %v442_v17 = vadd.f32 %v405_v57, %v1067_v28  ;;  %v548_v26 = vsel %vm146_vm2, %v494_v18, 0.0  ;;  %v492_v56 = vmul.f32 %v1073_v30, %v468_v54  ;;  %v1139_v57 = vpop.permute.xlu2 %561 }
 0x232   :  { %513 = vadd.xlane.f32.xlu2 %v512_v60  ;;  %507 = vadd.xlane.f32.xlu1 %v506_v61  ;;  %v539_v34 = vsel %vm146_vm2, %v491_v20, 0.0  ;;  %v554_v22 = vsel %vm146_vm2, %v496_v55, 0.0  ;;  %v604_v61 = vlaneseq }
 0x233   :  { %501 = vadd.xlane.f32.xlu0 %v500_v62  ;;  %v462_v25 = vmax.f32 %v442_v17, 0.0 }
 0x234   :  { %v1141_v62 = vand.u32 127, %v604_v61 }
 0x235   :  { %v486_v31 = vmul.f32 %v1073_v30, %v462_v25 }
 0x237   :  { %v524_v36 = vsel %vm146_vm2, %v486_v31, 0.0 }
 0x238   :  { %v408_v7 = vpop.f32.mrf.mxu1 }
 0x239   :  { %v443_v27 = vadd.f32 %v408_v7, %v1067_v28 }
 0x23a   :  { %522 = vadd.xlane.f32.xlu2 %v521_v8  ;;  %519 = vadd.xlane.f32.xlu1 %v518_v9 }
 0x23b   :  { %516 = vadd.xlane.f32.xlu0 %v515_v12  ;;  %v463_v33 = vmax.f32 %v443_v27, 0.0 }
 0x23d   :  { %v487_v38 = vmul.f32 %v1073_v30, %v463_v33 }
 0x23f   :  { %v527_v43 = vsel %vm146_vm2, %v487_v38, 0.0 }
 0x240   :  { %v410_v19 = vpop.f32.mrf.mxu1 }
 0x241   :  { %v444_v29 = vadd.f32 %v410_v19, %v1067_v28 }
 0x242   :  { %552 = vadd.xlane.f32.xlu2 %v551_v21  ;;  %546 = vadd.xlane.f32.xlu1 %v545_v23 }
 0x243   :  { %549 = vadd.xlane.f32.xlu0 %v548_v26  ;;  %v464_v35 = vmax.f32 %v444_v29, 0.0 }
 0x245   :  { %v488_v39 = vmul.f32 %v1073_v30, %v464_v35 }
 0x247   :  { %v530_v45 = vsel %vm146_vm2, %v488_v39, 0.0 }
 0x248   :  { %v413_v32 = vpop.f32.mrf.mxu1 }
 0x249   :  { %v445_v37 = vadd.f32 %v413_v32, %v1067_v28 }
 0x24a   :  { %540 = vadd.xlane.f32.xlu1 %v539_v34 }
 0x24b   :  { %525 = vadd.xlane.f32.xlu0 %v524_v36  ;;  %v465_v41 = vmax.f32 %v445_v37, 0.0 }
 0x24d   :  { %v489_v48 = vmul.f32 %v1073_v30, %v465_v41 }
 0x24f   :  { %v533_v52 = vsel %vm146_vm2, %v489_v48, 0.0 }
 0x250   :  { %v415_v40 = vpop.f32.mrf.mxu1 }
 0x251   :  { %v446_v42 = vadd.f32 %v415_v40, %v1067_v28  ;;  %v542_v28 = vsel %vm146_vm2, %v492_v56, 0.0 }
 0x252   :  { %528 = vadd.xlane.f32.xlu1 %v527_v43 }
 0x253   :  { %v466_v46 = vmax.f32 %v446_v42, 0.0  ;;  %531 = vadd.xlane.f32.xlu0 %v530_v45 }
 0x255   :  { %v490_v49 = vmul.f32 %v1073_v30, %v466_v46 }
 0x257   :  { %v536_v53 = vsel %vm146_vm2, %v490_v49, 0.0 }
 0x25a   :  { %534 = vadd.xlane.f32.xlu1 %v533_v52 }
 0x25b   :  { %537 = vadd.xlane.f32.xlu0 %v536_v53 }
 0x262   :  { %555 = vadd.xlane.f32.xlu1 %v554_v22 }
 0x263   :  { %543 = vadd.xlane.f32.xlu0 %v542_v28 }
 0x29d   :  { %v505_v58 = vpop.xlane.xlu1 %504  ;;  %v511_v60 = vpop.xlane.xlu2 %510 }
 0x29e   :  { %v499_v59 = vpop.xlane.xlu0 %498  ;;  %v566_v30 = vadd.f32 %v1139_v57, %v505_v58  ;;  %v568_v4 = vadd.f32 %v1139_v57, %v511_v60 }
 0x29f   :  { %v564_v63 = vadd.f32 %v1139_v57, %v499_v59 }
 0x2a0   :  { %v608_v8 = vperm.slane %v566_v30, %v1141_v62  ;;  %v610_v13 = vperm.slane %v568_v4, %v1141_v62 }
 0x2a1   :  { %v606_v5 = vperm.slane %v564_v63, %v1141_v62 }
 0x2a5   :  { %v508_v0 = vpop.xlane.xlu1 %507  ;;  %v514_v6 = vpop.xlane.xlu2 %513 }
 0x2a6   :  { %v502_v1 = vpop.xlane.xlu0 %501  ;;  %v567_v2 = vadd.f32 %v1139_v57, %v508_v0  ;;  %v569_v11 = vadd.f32 %v1139_v57, %v514_v6 }
 0x2a7   :  { %v565_v3 = vadd.f32 %v1139_v57, %v502_v1 }
 0x2a8   :  { %v609_v9 = vperm.slane %v567_v2, %v1141_v62  ;;  %v611_v21 = vperm.slane %v569_v11, %v1141_v62 }
 0x2a9   :  { %v607_v7 = vperm.slane %v565_v3, %v1141_v62 }
 0x2ab   :  { %v627_v10 = vsel %vm626_vm5, %v607_v7, %v606_v5 }
 0x2ac   :  { %v629_v12 = vsel %vm628_vm6, %v608_v8, %v627_v10 }
 0x2ad   :  { %v520_v14 = vpop.xlane.xlu1 %519  ;;  %v631_v15 = vsel %vm630_vm7, %v609_v9, %v629_v12  ;;  %v523_v33 = vpop.xlane.xlu2 %522 }
 0x2ae   :  { %v571_v16 = vadd.f32 %v1139_v57, %v520_v14  ;;  %v517_v17 = vpop.xlane.xlu0 %516  ;;  %v633_v18 = vsel %vm632_vm8, %v610_v13, %v631_v15  ;;  %v572_v38 = vadd.f32 %v1139_v57, %v523_v33 }
 0x2af   :  { %v570_v19 = vadd.f32 %v1139_v57, %v517_v17  ;;  %v635_v25 = vsel %vm634_vm9, %v611_v21, %v633_v18 }
 0x2b0   :  { %v613_v23 = vperm.slane %v571_v16, %v1141_v62  ;;  %v614_v42 = vperm.slane %v572_v38, %v1141_v62 }
 0x2b1   :  { %v612_v24 = vperm.slane %v570_v19, %v1141_v62 }
 0x2b3   :  { %v637_v26 = vsel %vm636_vm10, %v612_v24, %v635_v25 }
 0x2b4   :  { %v639_v27 = vsel %vm638_vm11, %v613_v23, %v637_v26 }
 0x2b5   :  { %v547_v20 = vpop.xlane.xlu1 %546  ;;  %654 = vst.msk [vmem:[%s1225_s14] sm:$0xff] %vm653_vm12, %v639_v27  ;;  %v553_v44 = vpop.xlane.xlu2 %552 }
 0x2b6   :  { %v550_v29 = vpop.xlane.xlu0 %549  ;;  %v580_v45 = vadd.f32 %v1139_v57, %v547_v20  ;;  %v582_v54 = vadd.f32 %v1139_v57, %v553_v44 }
 0x2b7   :  { %v581_v46 = vadd.f32 %v1139_v57, %v550_v29 }
 0x2b8   :  { %v622_v55 = vperm.slane %v580_v45, %v1141_v62  ;;  %v624_v60 = vperm.slane %v582_v54, %v1141_v62 }
 0x2b9   :  { %v623_v56 = vperm.slane %v581_v46, %v1141_v62 }
 0x2bb   :  { %v647_v63 = vsel %vm626_vm5, %v623_v56, %v622_v55 }
 0x2bc   :  { %v648_v5 = vsel %vm628_vm6, %v624_v60, %v647_v63 }
 0x2bd   :  { %v541_v31 = vpop.xlane.xlu1 %540 }
 0x2be   :  { %v526_v32 = vpop.xlane.xlu0 %525  ;;  %v578_v58 = vadd.f32 %v1139_v57, %v541_v31 }
 0x2bf   :  { %v573_v36 = vadd.f32 %v1139_v57, %v526_v32 }
 0x2c0   :  { %v620_v3 = vperm.slane %v578_v58, %v1141_v62 }
 0x2c1   :  { %v615_v39 = vperm.slane %v573_v36, %v1141_v62 }
 0x2c3   :  { %v640_v49 = vsel %vm626_vm5, %v615_v39, %v614_v42 }
 0x2c5   :  { %v529_v34 = vpop.xlane.xlu1 %528 }
 0x2c6   :  { %v532_v35 = vpop.xlane.xlu0 %531  ;;  %v574_v37 = vadd.f32 %v1139_v57, %v529_v34 }
 0x2c7   :  { %v575_v40 = vadd.f32 %v1139_v57, %v532_v35 }
 0x2c8   :  { %v616_v41 = vperm.slane %v574_v37, %v1141_v62 }
 0x2c9   :  { %v617_v50 = vperm.slane %v575_v40, %v1141_v62 }
 0x2ca   :  { %v641_v52 = vsel %vm628_vm6, %v616_v41, %v640_v49 }
 0x2cb   :  { %v642_v22 = vsel %vm630_vm7, %v617_v50, %v641_v52 }
 0x2cd   :  { %v535_v43 = vpop.xlane.xlu1 %534 }
 0x2ce   :  { %v576_v47 = vadd.f32 %v1139_v57, %v535_v43  ;;  %v538_v48 = vpop.xlane.xlu0 %537 }
 0x2cf   :  { %v577_v51 = vadd.f32 %v1139_v57, %v538_v48 }
 0x2d0   :  { %v618_v53 = vperm.slane %v576_v47, %v1141_v62 }
 0x2d1   :  { %v619_v28 = vperm.slane %v577_v51, %v1141_v62 }
 0x2d2   :  { %v643_v59 = vsel %vm632_vm8, %v618_v53, %v642_v22 }
 0x2d3   :  { %v644_v1 = vsel %vm634_vm9, %v619_v28, %v643_v59 }
 0x2d4   :  { %v645_v8 = vsel %vm636_vm10, %v620_v3, %v644_v1 }
 0x2d5   :  { %v556_v61 = vpop.xlane.xlu1 %555 }
 0x2d6   :  { %v583_v0 = vadd.f32 %v1139_v57, %v556_v61  ;;  %v544_v30 = vpop.xlane.xlu0 %543 }
 0x2d7   :  { %v579_v2 = vadd.f32 %v1139_v57, %v544_v30 }
 0x2d8   :  { %v625_v4 = vperm.slane %v583_v0, %v1141_v62 }
 0x2d9   :  { %v621_v6 = vperm.slane %v579_v2, %v1141_v62 }
 0x2da   :  { %v649_v7 = vsel %vm630_vm7, %v625_v4, %v648_v5 }
 0x2db   :  { %657 = vst.msk [vmem:[%s1225_s14 + $0x10] sm:$0xf] %vm656_vm13, %v649_v7  ;;  %v646_v9 = vsel %vm638_vm11, %v621_v6, %v645_v8 }
 0x2dc   :  { %655 = vst.msk [vmem:[%s1225_s14 + $0x8] sm:$0xff] %vm653_vm12, %v646_v9 }
 0x2dd   :  { %787 = dma.done.wait [#allocation4], 128  }
 0x2de   :  { %788 = vsyncadd [#allocation4], 4294967168 }
 0x2df   :  { %677 = vsyncpa [#allocation4], 1 }

</bundles_post_ra>
